<compile_context>
chip_gen: v7x
topology: tpu7x:2x2x1
jax: 0.10.0
libtpu: 0.0.40
codegen_flags: <defaults>
</compile_context>

<pallas_src>
import jax
import jax.numpy as jnp
from jax.experimental import pallas as pl
from jax.experimental.pallas import tpu as pltpu

C_IN, C_OUT, KH, KW = 1, 128, 3, 3
K = KH * KW + 1           # 9 conv taps + 1 ones-row carrying the bias
S_TILE = 2048             # spatial tile size (multiple of 128)

_A = 0.044715
_B = 0.044715 * (-1.1447298873223556e-08)


def _conv_act_kernel(a_ref, w_ref, o_ref):
    # a_ref: (1, K, S_T)    per-image im2col taps (+ ones row), spatial on lanes
    # w_ref: (C_OUT, K)     conv weights with bias folded in as the last column
    # o_ref: (1, C_OUT, S_T) output tile, already NCHW-flattened
    v1 = jnp.dot(w_ref[...], a_ref[0], preferred_element_type=jnp.float32)
    t = jnp.tanh(v1 * (_A + _B * (v1 * v1)))
    o_ref[0] = ((3.0 * v1) * (t + 1.0)).astype(o_ref.dtype)


def _im2col_with_bias_row(x_nchw):
    # x_nchw: [N, 1, H, W] -> [N, K, OH*OW]  (9 taps + ones row, spatial last)
    n, c, h, w = x_nchw.shape
    assert c == C_IN
    oh, ow = h - KH + 1, w - KW + 1
    cols = [x_nchw[:, 0, i:i + oh, j:j + ow]          # each [N, OH, OW]
            for i in range(KH) for j in range(KW)]
    taps = jnp.stack(cols, axis=1).reshape(n, KH * KW, oh * ow)
    ones = jnp.ones((n, 1, oh * ow), taps.dtype)
    return jnp.concatenate([taps, ones], axis=1), (oh, ow)


@jax.jit
def model_forward(x_nchw, weight, bias):
    """x_nchw: [N, 1, H, W] f32; weight: [128, 1, 3, 3]; bias: [128]."""
    n = x_nchw.shape[0]
    taps, (oh, ow) = _im2col_with_bias_row(x_nchw.astype(jnp.float32))
    s = oh * ow

    # [C_OUT, 9] weights with the bias appended as a 10th column.
    w10 = jnp.concatenate(
        [weight.reshape(C_OUT, KH * KW), bias.reshape(C_OUT, 1)],
        axis=1).astype(jnp.float32)

    # Spatial tiling: one full-extent tile for small images; otherwise
    # 128-multiple tiles with raggedness confined to the tail tile.
    s_t = s if s <= S_TILE else S_TILE
    grid_s = pl.cdiv(s, s_t)

    cost = pl.CostEstimate(
        flops=2 * C_OUT * K * s * n + 8 * C_OUT * s * n,
        transcendentals=C_OUT * s * n,
        bytes_accessed=4 * (K * s * n + C_OUT * s * n + C_OUT * K),
    )

    out = pl.pallas_call(
        _conv_act_kernel,
        out_shape=jax.ShapeDtypeStruct((n, C_OUT, s), jnp.float32),
        grid_spec=pltpu.PrefetchScalarGridSpec(
            num_scalar_prefetch=0,
            grid=(n, grid_s),
            in_specs=[
                pl.BlockSpec((1, K, s_t), lambda i, j: (i, 0, j)),
                pl.BlockSpec((C_OUT, K), lambda i, j: (0, 0)),
            ],
            out_specs=pl.BlockSpec((1, C_OUT, s_t), lambda i, j: (i, 0, j)),
        ),
        compiler_params=pltpu.CompilerParams(
            dimension_semantics=("parallel", "parallel")),
        cost_estimate=cost,
    )(taps, w10)

    # Contiguous reshape only -- no transpose / slice pass over the output.
    return out.reshape(n, C_OUT, oh, ow)


def _reference(x_nchw, weight, bias):
    v1 = jax.lax.conv_general_dilated(
        x_nchw, weight, window_strides=(1, 1), padding="VALID",
        dimension_numbers=("NCHW", "OIHW", "NCHW"))
    v1 = v1 + bias.reshape(1, C_OUT, 1, 1)
    v2 = v1 * 3.0
    v4 = v1 * v1 * v1
    v6 = v1 + v4 * (-1.1447298873223556e-08)
    v8 = jnp.tanh(v6 * 0.044715)
    return v2 * (v8 + 1.0)


if __name__ == "__main__":
    key = jax.random.PRNGKey(0)
    kx, kw, kb = jax.random.split(key, 3)

    weight = jax.random.normal(kw, (C_OUT, C_IN, KH, KW), jnp.float32) * 0.1
    bias = jax.random.normal(kb, (C_OUT,), jnp.float32) * 0.1

    # Small image (single spatial tile, batch 2). The original 1x1 spatial
    # input would be invalid for kernel=3 / padding=0, so use 16x16.
    x_small = jax.random.normal(kx, (2, 1, 16, 16), dtype=jnp.float32)
    out_small = model_forward(x_small, weight, bias)
    jax.block_until_ready(out_small)
    ref_small = _reference(x_small, weight, bias)
    assert out_small.shape == (2, C_OUT, 14, 14), out_small.shape
    assert jnp.allclose(out_small, ref_small, atol=1e-4, rtol=1e-4), "mismatch (small)"

    # Larger image: S = 48*48 = 2304 > 2048 -> exercises the ragged tail tile.
    x_big = jax.random.normal(kx, (1, 1, 50, 50), dtype=jnp.float32)
    out_big = model_forward(x_big, weight, bias)
    jax.block_until_ready(out_big)
    ref_big = _reference(x_big, weight, bias)
    assert out_big.shape == (1, C_OUT, 48, 48), out_big.shape
    assert jnp.allclose(out_big, ref_big, atol=1e-4, rtol=1e-4), "mismatch (big)"

    print("KERNEL_OK")
</pallas_src>

<mosaic_0001>
module attributes {stable_mosaic.version = 11 : i64} {
  func.func @_conv_act_kernel(%arg0: i32, %arg1: i32, %arg2: memref<1x10x196xf32, #tpu.memory_space<vmem>>, %arg3: memref<128x10xf32, #tpu.memory_space<vmem>>, %arg4: memref<1x128x196xf32, #tpu.memory_space<vmem>>) attributes {dimension_semantics = [#tpu.dimension_semantics<parallel>, #tpu.dimension_semantics<parallel>], iteration_bounds = array<i64: 2, 1>, scalar_prefetch = 0 : i64, scratch_operands = 0 : i64, tpu.core_type = #tpu.core_type<tc>, window_params = [{transform_indices = @transform_0, window_bounds = array<i64: 1, 10, 196>}, {pipeline_mode = #tpu.pipeline_mode<synchronous>, transform_indices = @transform_1, window_bounds = array<i64: 128, 10>}, {transform_indices = @transform_2, window_bounds = array<i64: 1, 128, 196>}]} {
    %c0 = arith.constant 0 : index
    %c0_0 = arith.constant 0 : index
    %0 = vector.load %arg3[%c0, %c0_0] : memref<128x10xf32, #tpu.memory_space<vmem>>, vector<128x10xf32>
    %c0_1 = arith.constant 0 : index
    %c0_2 = arith.constant 0 : index
    %c0_3 = arith.constant 0 : index
    %1 = vector.load %arg2[%c0_1, %c0_2, %c0_3] : memref<1x10x196xf32, #tpu.memory_space<vmem>>, vector<1x10x196xf32>
    %2 = vector.shape_cast %1 : vector<1x10x196xf32> to vector<10x196xf32>
    %cst = arith.constant dense<0.000000e+00> : vector<128x196xf32>
    %3 = tpu.matmul %0, %2, %cst {dimension_numbers = #tpu.dot_dimension_numbers<[1], [0], [0], [1], [0, 0, 1, 1], [], []>} : vector<128x10xf32>, vector<10x196xf32>, vector<128x196xf32> -> vector<128x196xf32>
    %4 = arith.mulf %3, %3 : vector<128x196xf32>
    %cst_4 = arith.constant -5.118660e-10 : f32
    %5 = vector.broadcast %cst_4 : f32 to vector<128x196xf32>
    %6 = arith.mulf %5, %4 : vector<128x196xf32>
    %cst_5 = arith.constant 4.471500e-02 : f32
    %7 = vector.broadcast %cst_5 : f32 to vector<128x196xf32>
    %8 = arith.addf %7, %6 : vector<128x196xf32>
    %9 = arith.mulf %3, %8 : vector<128x196xf32>
    %10 = math.tanh %9 : vector<128x196xf32>
    %cst_6 = arith.constant 3.000000e+00 : f32
    %11 = vector.broadcast %cst_6 : f32 to vector<128x196xf32>
    %12 = arith.mulf %11, %3 : vector<128x196xf32>
    %cst_7 = arith.constant 1.000000e+00 : f32
    %13 = vector.broadcast %cst_7 : f32 to vector<128x196xf32>
    %14 = arith.addf %10, %13 : vector<128x196xf32>
    %15 = arith.mulf %12, %14 : vector<128x196xf32>
    %c0_8 = arith.constant 0 : index
    %c0_9 = arith.constant 0 : index
    %c0_10 = arith.constant 0 : index
    %16 = vector.load %arg4[%c0_8, %c0_9, %c0_10] : memref<1x128x196xf32, #tpu.memory_space<vmem>>, vector<1x128x196xf32>
    %17 = vector.shape_cast %16 : vector<1x128x196xf32> to vector<128x196xf32>
    %18 = vector.shape_cast %15 : vector<128x196xf32> to vector<1x128x196xf32>
    tpu.vector_store %arg4[%c0_8, %c0_9, %c0_10], %18 {strides = array<i32>} : memref<1x128x196xf32, #tpu.memory_space<vmem>>, vector<1x128x196xf32>,
    return
  }
  func.func @transform_0(%arg0: i32, %arg1: i32) -> (i32, i32, i32) {
    %c0_i32 = arith.constant 0 : i32
    %c0_i32_0 = arith.constant 0 : i32
    return %arg0, %c0_i32, %arg1 : i32, i32, i32
  }
  func.func @transform_1(%arg0: i32, %arg1: i32) -> (i32, i32) {
    %c0_i32 = arith.constant 0 : i32
    %c0_i32_0 = arith.constant 0 : i32
    %c0_i32_1 = arith.constant 0 : i32
    return %c0_i32, %c0_i32_0 : i32, i32
  }
  func.func @transform_2(%arg0: i32, %arg1: i32) -> (i32, i32, i32) {
    %c0_i32 = arith.constant 0 : i32
    %c0_i32_0 = arith.constant 0 : i32
    return %arg0, %c0_i32, %arg1 : i32, i32, i32
  }
}

</mosaic_0001>

<bundles_post_ra>
// kernel: model_forward.1
= control target key start
LH: loop header
LB: loop body
LE: loop exit
PB: predicated region body
PF: predicated region fallthrough
CT: control target
= control target key end

     0   :  { %s966_s9 = smov 0   ;;  %s968_s10 = smov 0   ;;  %s1285_s0 = inlined_call_operand.vmem [shape: f32[2,10,196], index: 0, kind: input, shape index: {}]   ;;  %s1286_s1 = inlined_call_operand.vmem [shape: f32[128,10], index: 1, kind: input, shape index: {}]   ;;  %s1287_s2 = inlined_call_operand.vmem [shape: f32[2,128,196], index: 2, kind: output, shape index: {}]  }
   0x1   :  { %s970_s11 = smov 0  }
   0x2 LB: > { %s24_s12 = sadd.s32 1, %s943_s10  ;;  %p800_p0 = scmp.ge.s32.totalorder %s947_s11, 1  ;;  %s947_s11 = sphi %s970_s11, %s12_s11   ;;  %s943_s10 = sphi %s968_s10, %s1289_s10   ;;  %s939_s9 = sphi %s966_s9, %s1288_s9  }
   0x3   : > { %p26_p1 = scmp.ge.s32.totalorder %s24_s12, 2  ;;  %p133_p2 = scmp.lt.s32.totalorder %s947_s11, 3 }
   0x5   : > { %s1291_s12 = smov (%p26_p1, %s24_s12), 0  ;;  %p134_p3 = pnand %p800_p0, %p133_p2 }
   0x6   : > { %p164_p4 = scmp.lt.s32.totalorder (!%p134_p3), %s939_s9, 1  ;;  %v949_v0 = vmov (!%p134_p3), 0.0   ;;  %vm252_vm0 = vcmask (!%p134_p3), 1041408   ;;  %vm950_vm1 = vmmov (!%p134_p3), 1   ;;  %v183_v7 = vld [vmem:[%s1286_s1] sm:$0xff] (!%p134_p3)  ;;  %vm203_vm3 = vcmask (!%p134_p3), 80896  }
   0x7   : > { %137 = sbr.rel (%p134_p3) target bundleno = 313 (0x139), region = 28  ;;  %323 = vmatprep.mubr.f32.mxu0 (!%p134_p3), %v949_v0  ;;  %371 = vmatprep.mubr.f32.mxu1 (!%p134_p3), %v949_v0  ;;  %vm828_vm2 = vmpackc.low (!%p134_p3), %vm252_vm0, %vm950_vm1  ;;  %v191_v8 = vld [vmem:[%s1286_s1 + $0x40] sm:$0xff] (!%p134_p3)  ;;  %v184_v9 = vld [vmem:[%s1286_s1 + $0x8] sm:$0xff] (!%p134_p3)  ;;  %vm677_vm4 = vcmask (!%p134_p3), 556032  }
   0x8   : > { %v192_v10 = vld [vmem:[%s1286_s1 + $0x48] sm:$0xff] (!%p134_p3)  ;;  %v185_v11 = vld [vmem:[%s1286_s1 + $0x10] sm:$0xff] (!%p134_p3)  ;;  %v186_v13 = vld [vmem:[%s1286_s1 + $0x18] sm:$0xff] (!%p134_p3) }
   0x9   : > { %v193_v12 = vld [vmem:[%s1286_s1 + $0x50] sm:$0xff] (!%p134_p3)  ;;  %v194_v14 = vld [vmem:[%s1286_s1 + $0x58] sm:$0xff] (!%p134_p3)  ;;  %v187_v15 = vld [vmem:[%s1286_s1 + $0x20] sm:$0xff] (!%p134_p3) }
   0xa   : > { %v195_v16 = vld [vmem:[%s1286_s1 + $0x60] sm:$0xff] (!%p134_p3)  ;;  %v188_v17 = vld [vmem:[%s1286_s1 + $0x28] sm:$0xff] (!%p134_p3)  ;;  %v189_v19 = vld [vmem:[%s1286_s1 + $0x30] sm:$0xff] (!%p134_p3) }
   0xb   : > { %v196_v18 = vld [vmem:[%s1286_s1 + $0x68] sm:$0xff] (!%p134_p3)  ;;  %v197_v20 = vld [vmem:[%s1286_s1 + $0x70] sm:$0xff] (!%p134_p3)  ;;  %v190_v21 = vld [vmem:[%s1286_s1 + $0x38] sm:$0xff] (!%p134_p3) }
   0xc   : > { %v198_v22 = vld [vmem:[%s1286_s1 + $0x78] sm:$0xff] (!%p134_p3) }
   0xe   : > { %s1293_s9 = smov (!%p164_p4, %s939_s9), 1 }
   0xf   : > { %s825_s13 = sshll.u32 %s1293_s9, 5  ;;  %s826_s25 = sshll.u32 %s1293_s9, 8 }
  0x10   : > { %s171_s16 = scalar_lea.vmem %s1285_s0, %s825_s13  ;;  %s1120_s27 = scalar_lea.vmem %s1287_s2, %s826_s25 }
  0x11   : > { %v200_v1 = vld [vmem:[%s171_s16 + $0x8] sm:$0xff]  ;;  %v202_v2 = vld [vmem:[%s171_s16 + $0x18] sm:$0x3]  ;;  %v199_v3 = vld [vmem:[%s171_s16] sm:$0xff] }
  0x12   : > { %v827_v4 = vpack.c.bf16 %v202_v2, %v200_v1  ;;  %v201_v5 = vld [vmem:[%s171_s16 + $0x10] sm:$0x3] }
  0x13   : > { %v830_v6 = vpack.c.bf16 %v201_v5, %v199_v3 }
  0x14   : > { %829 = vmatprep.subr.msk.bf16.mxu0 %vm828_vm2, %v827_v4  ;;  %833 = vmatprep.subr.msk.bf16.mxu1 %vm828_vm2, %v827_v4 }
  0x15   : > { %832 = vmatpush1.bf16.msk.msra.mxu0 %vm828_vm2, %v830_v6  ;;  %834 = vmatpush1.bf16.msk.msra.mxu1 %vm828_vm2, %v830_v6 }
  0x18   : > { %807 = vmatmul.mubr.msk.f32.vlgmr.msra.gmra.mrb[0].mxu0 %vm203_vm3, %v183_v7  ;;  %815 = vmatmul.mubr.msk.f32.vlgmr.msra.gmra.mrb[0].mxu1 %vm203_vm3, %v191_v8 }
  0x19   : > { %329 = vmatprep.mubr.f32.mxu0 %v949_v0  ;;  %377 = vmatprep.mubr.f32.mxu1 %v949_v0 }
  0x1c   : > { %808 = vmatmul.mubr.msk.f32.gmra.mrb[2].mxu0 %vm203_vm3, %v184_v9  ;;  %816 = vmatmul.mubr.msk.f32.gmra.mrb[2].mxu1 %vm203_vm3, %v192_v10 }
  0x1d   : > { %335 = vmatprep.mubr.f32.mxu0 %v949_v0  ;;  %383 = vmatprep.mubr.f32.mxu1 %v949_v0 }
  0x20   : > { %809 = vmatmul.mubr.msk.f32.gmra.mrb[4].mxu0 %vm203_vm3, %v185_v11  ;;  %817 = vmatmul.mubr.msk.f32.gmra.mrb[4].mxu1 %vm203_vm3, %v193_v12 }
  0x21   : > { %341 = vmatprep.mubr.f32.mxu0 %v949_v0  ;;  %389 = vmatprep.mubr.f32.mxu1 %v949_v0 }
  0x24   : > { %810 = vmatmul.mubr.msk.f32.gmra.mrb[6].mxu0 %vm203_vm3, %v186_v13  ;;  %818 = vmatmul.mubr.msk.f32.gmra.mrb[6].mxu1 %vm203_vm3, %v194_v14 }
  0x25   : > { %347 = vmatprep.mubr.f32.mxu0 %v949_v0  ;;  %395 = vmatprep.mubr.f32.mxu1 %v949_v0 }
  0x28   : > { %811 = vmatmul.mubr.msk.f32.gmra.mrb[8].mxu0 %vm203_vm3, %v187_v15  ;;  %819 = vmatmul.mubr.msk.f32.gmra.mrb[8].mxu1 %vm203_vm3, %v195_v16 }
  0x29   : > { %353 = vmatprep.mubr.f32.mxu0 %v949_v0  ;;  %401 = vmatprep.mubr.f32.mxu1 %v949_v0 }
  0x2c   : > { %812 = vmatmul.mubr.msk.f32.gmra.mrb[10].mxu0 %vm203_vm3, %v188_v17  ;;  %820 = vmatmul.mubr.msk.f32.gmra.mrb[10].mxu1 %vm203_vm3, %v196_v18 }
  0x2d   : > { %359 = vmatprep.mubr.f32.mxu0 %v949_v0  ;;  %407 = vmatprep.mubr.f32.mxu1 %v949_v0 }
  0x30   : > { %813 = vmatmul.mubr.msk.f32.gmra.mrb[12].mxu0 %vm203_vm3, %v189_v19  ;;  %821 = vmatmul.mubr.msk.f32.gmra.mrb[12].mxu1 %vm203_vm3, %v197_v20 }
  0x31   : > { %365 = vmatprep.mubr.f32.mxu0 %v949_v0  ;;  %413 = vmatprep.mubr.f32.mxu1 %v949_v0 }
  0x34   : > { %814 = vmatmul.mubr.msk.f32.gmra.mrb[14].mxu0 %vm203_vm3, %v190_v21  ;;  %822 = vmatmul.mubr.msk.f32.gmra.mrb[14].mxu1 %vm203_vm3, %v198_v22 }
  0xeb   : > { %v325_v23 = vpop.f32.mrb[0].mxu0  ;;  %v373_v24 = vpop.f32.mrb[0].mxu1 }
  0xec   : > { %v420_v25 = vmul.f32 %v325_v23, %v325_v23  ;;  %v436_v26 = vmul.f32 %v373_v24, %v373_v24  ;;  %v327_v27 = vpop.f32.mrb[1].mxu0  ;;  %v375_v28 = vpop.f32.mrb[1].mxu1  ;;  %v1070_v59 = vmul.f32 3.0, %v325_v23  ;;  %v1074_v1 = vmul.f32 3.0, %v373_v24 }
  0xed   : > { %v421_v29 = vmul.f32 %v327_v27, %v327_v27  ;;  %v437_v30 = vmul.f32 %v375_v28, %v375_v28  ;;  %v581_v11 = vmul.f32 3.0, %v327_v27  ;;  %v597_v14 = vmul.f32 3.0, %v375_v28 }
  0xee   : > { %v452_v31 = vmul.f32 -5.11866e-10, %v420_v25  ;;  %v468_v32 = vmul.f32 -5.11866e-10, %v436_v26 }
  0xef   : > { %v453_v33 = vmul.f32 -5.11866e-10, %v421_v29  ;;  %v469_v34 = vmul.f32 -5.11866e-10, %v437_v30  ;;  %v331_v35 = vpop.f32.mrb[2].mxu0  ;;  %v379_v36 = vpop.f32.mrb[2].mxu1 }
  0xf0   : > { %v484_v37 = vadd.f32 0.044715, %v452_v31  ;;  %v500_v38 = vadd.f32 0.044715, %v468_v32  ;;  %v422_v39 = vmul.f32 %v331_v35, %v331_v35  ;;  %v1054_v40 = vpop.f32.mrb[3].mxu0  ;;  %v438_v43 = vmul.f32 %v379_v36, %v379_v36  ;;  %v1056_v44 = vpop.f32.mrb[3].mxu1 }
  0xf1   : > { %v485_v41 = vadd.f32 0.044715, %v453_v33  ;;  %v501_v42 = vadd.f32 0.044715, %v469_v34  ;;  %v423_v48 = vmul.f32 %v1054_v40, %v1054_v40  ;;  %v439_v56 = vmul.f32 %v1056_v44, %v1056_v44 }
  0xf2   : > { %v516_v45 = vmul.f32 %v484_v37, %v325_v23  ;;  %v532_v46 = vmul.f32 %v500_v38, %v373_v24  ;;  %v454_v47 = vmul.f32 -5.11866e-10, %v422_v39  ;;  %v470_v51 = vmul.f32 -5.11866e-10, %v438_v43 }
  0xf3   : > { %v517_v49 = vmul.f32 %v485_v41, %v327_v27  ;;  %v533_v50 = vmul.f32 %v501_v42, %v375_v28  ;;  %v1060_v52 = vpop.f32.mrb[4].mxu0  ;;  %v1062_v53 = vpop.f32.mrb[4].mxu1  ;;  %v455_v55 = vmul.f32 -5.11866e-10, %v423_v48  ;;  %v471_v0 = vmul.f32 -5.11866e-10, %v439_v56 }
  0xf4   : > { %861 = vtanh.f32 %v516_v45  ;;  %v486_v54 = vadd.f32 0.044715, %v454_v47  ;;  %v1066_v57 = vpop.f32.mrb[5].mxu0  ;;  %v1068_v58 = vpop.f32.mrb[5].mxu1  ;;  %v502_v60 = vadd.f32 0.044715, %v470_v51  ;;  %v424_v61 = vmul.f32 %v1060_v52, %v1060_v52 }
  0xf5   : > { %863 = vtanh.f32 %v532_v46  ;;  %v487_v63 = vadd.f32 0.044715, %v455_v55  ;;  %v503_v7 = vadd.f32 0.044715, %v471_v0  ;;  %v440_v8 = vmul.f32 %v1062_v53, %v1062_v53 }
  0xf6   : > { %865 = vtanh.f32 %v517_v49  ;;  %v518_v62 = vmul.f32 %v486_v54, %v331_v35  ;;  %v534_v2 = vmul.f32 %v502_v60, %v379_v36  ;;  %v456_v3 = vmul.f32 -5.11866e-10, %v424_v61 }
  0xf7   : > { %867 = vtanh.f32 %v533_v50  ;;  %v1076_v4 = vpop.f32.mrb[6].mxu0  ;;  %v1078_v5 = vpop.f32.mrb[6].mxu1  ;;  %v519_v6 = vmul.f32 %v487_v63, %v1054_v40  ;;  %v425_v13 = vmul.f32 %v1066_v57, %v1066_v57  ;;  %v535_v15 = vmul.f32 %v503_v7, %v1056_v44 }
  0xf8   : > { %869 = vtanh.f32 %v518_v62  ;;  %v1083_v9 = vpop.f32.mrb[7].mxu0  ;;  %v1085_v10 = vpop.f32.mrb[7].mxu1  ;;  %v488_v12 = vadd.f32 0.044715, %v456_v3  ;;  %v472_v16 = vmul.f32 -5.11866e-10, %v440_v8  ;;  %v441_v20 = vmul.f32 %v1068_v58, %v1068_v58 }
  0xf9   : > { %871 = vtanh.f32 %v534_v2  ;;  %v1090_v17 = vmul.f32 3.0, %v331_v35  ;;  %v457_v19 = vmul.f32 -5.11866e-10, %v425_v13  ;;  %v1099_v23 = vmul.f32 3.0, %v379_v36 }
  0xfa   : > { %873 = vtanh.f32 %v519_v6  ;;  %v520_v18 = vmul.f32 %v488_v12, %v1060_v52  ;;  %v504_v24 = vadd.f32 0.044715, %v472_v16  ;;  %v426_v25 = vmul.f32 %v1076_v4, %v1076_v4 }
  0xfb   : > { %v1095_v21 = vpop.f32.mrb[8].mxu0  ;;  %v1097_v22 = vpop.f32.mrb[8].mxu1  ;;  %875 = vtanh.f32 %v535_v15  ;;  %v489_v28 = vadd.f32 0.044715, %v457_v19  ;;  %v473_v29 = vmul.f32 -5.11866e-10, %v441_v20  ;;  %v442_v30 = vmul.f32 %v1078_v5, %v1078_v5 }
  0xfc   : > { %v1103_v26 = vpop.f32.mrb[9].mxu0  ;;  %v1105_v27 = vpop.f32.mrb[9].mxu1  ;;  %877 = vtanh.f32 %v520_v18  ;;  %v583_v32 = vmul.f32 3.0, %v1054_v40  ;;  %v536_v33 = vmul.f32 %v504_v24, %v1062_v53  ;;  %v458_v34 = vmul.f32 -5.11866e-10, %v426_v25 }
  0xfd   : > { %v427_v35 = vmul.f32 %v1083_v9, %v1083_v9  ;;  %v521_v38 = vmul.f32 %v489_v28, %v1066_v57  ;;  %v505_v39 = vadd.f32 0.044715, %v473_v29  ;;  %v474_v41 = vmul.f32 -5.11866e-10, %v442_v30 }
  0xfe   : > { %v862_v31 = vpop.eup %861  ;;  %879 = vtanh.f32 %v536_v33  ;;  %v490_v45 = vadd.f32 0.044715, %v458_v34  ;;  %v599_v19 = vmul.f32 3.0, %v1056_v44  ;;  %v584_v25 = vmul.f32 3.0, %v1060_v52 }
  0xff   : > { %v864_v36 = vpop.eup %863  ;;  %v612_v37 = vadd.f32 1.0, %v862_v31  ;;  %v1115_v42 = vpop.f32.mrb[10].mxu0  ;;  %v459_v46 = vmul.f32 -5.11866e-10, %v427_v35  ;;  %881 = vtanh.f32 %v521_v38  ;;  %v537_v51 = vmul.f32 %v505_v39, %v1068_v58 }
 0x100   : > { %v866_v43 = vpop.eup %865  ;;  %v628_v40 = vadd.f32 1.0, %v864_v36  ;;  %v1122_v47 = vpop.f32.mrb[10].mxu1  ;;  %v522_v62 = vmul.f32 %v490_v45, %v1076_v4  ;;  %v506_v63 = vadd.f32 0.044715, %v474_v41  ;;  %v443_v28 = vmul.f32 %v1085_v10, %v1085_v10 }
 0x101   : > { %v868_v48 = vpop.eup %867  ;;  %v644_v49 = vmul.f32 %v612_v37, %v1070_v59  ;;  %v613_v50 = vadd.f32 1.0, %v866_v43  ;;  %v1126_v54 = vpop.f32.mrb[11].mxu0  ;;  %883 = vtanh.f32 %v537_v51  ;;  %v491_v3 = vadd.f32 0.044715, %v459_v46 }
 0x102   : > { %v1128_v55 = vpop.f32.mrb[11].mxu1  ;;  %v870_v56 = vpop.eup %869  ;;  %v660_v60 = vmul.f32 %v628_v40, %v1074_v1  ;;  %v629_v61 = vadd.f32 1.0, %v868_v48  ;;  %885 = vtanh.f32 %v522_v62  ;;  %v538_v13 = vmul.f32 %v506_v63, %v1078_v5 }
 0x103   : > { %v872_v0 = vpop.eup %871  ;;  %676 = vst [vmem:[%s1120_s27] sm:$0xff] %v644_v49  ;;  %v645_v59 = vmul.f32 %v613_v50, %v581_v11  ;;  %v614_v2 = vadd.f32 1.0, %v870_v56  ;;  %v1133_v6 = vpop.f32.mrb[12].mxu0  ;;  %v523_v20 = vmul.f32 %v491_v3, %v1083_v9  ;;  %v428_v44 = vmul.f32 %v1095_v21, %v1095_v21 }
 0x104   : > { %v1135_v7 = vpop.f32.mrb[12].mxu1  ;;  %v874_v8 = vpop.eup %873  ;;  %693 = vst [vmem:[%s1120_s27 + $0x80] sm:$0xff] %v660_v60  ;;  %v661_v12 = vmul.f32 %v629_v61, %v597_v14  ;;  %v630_v1 = vadd.f32 1.0, %v872_v0  ;;  %887 = vtanh.f32 %v538_v13  ;;  %v600_v52 = vmul.f32 3.0, %v1062_v53 }
 0x105   : > { %v1139_v15 = vpop.f32.mrb[13].mxu0  ;;  %v1141_v16 = vpop.f32.mrb[13].mxu1  ;;  %678 = vst.msk [vmem:[%s1120_s27 + $0x8] sm:$0xff] %vm677_vm4, %v645_v59  ;;  %v646_v11 = vmul.f32 %v614_v2, %v1090_v17  ;;  %v615_v18 = vadd.f32 1.0, %v874_v8  ;;  %889 = vtanh.f32 %v523_v20  ;;  %v475_v34 = vmul.f32 -5.11866e-10, %v443_v28 }
 0x106   : > { %v876_v14 = vpop.eup %875  ;;  %694 = vst.msk [vmem:[%s1120_s27 + $0x88] sm:$0xff] %vm677_vm4, %v661_v12  ;;  %v662_v24 = vmul.f32 %v630_v1, %v1099_v23  ;;  %v444_v35 = vmul.f32 %v1097_v22, %v1097_v22  ;;  %v585_v38 = vmul.f32 3.0, %v1066_v57  ;;  %v460_v39 = vmul.f32 -5.11866e-10, %v428_v44 }
 0x107   : > { %v878_v29 = vpop.eup %877  ;;  %679 = vst [vmem:[%s1120_s27 + $0x10] sm:$0xff] %v646_v11  ;;  %v647_v17 = vmul.f32 %v615_v18, %v583_v32  ;;  %v631_v30 = vadd.f32 1.0, %v876_v14  ;;  %v1157_v31 = vpop.f32.mrb[14].mxu0  ;;  %v429_v41 = vmul.f32 %v1103_v26, %v1103_v26  ;;  %v601_v40 = vmul.f32 3.0, %v1068_v58 }
 0x108   : > { %v1159_v33 = vpop.f32.mrb[14].mxu1  ;;  %695 = vst [vmem:[%s1120_s27 + $0x90] sm:$0xff] %v662_v24  ;;  %v616_v23 = vadd.f32 1.0, %v878_v29  ;;  %v1165_v36 = vpop.f32.mrb[15].mxu0  ;;  %v507_v45 = vadd.f32 0.044715, %v475_v34  ;;  %v445_v56 = vmul.f32 %v1105_v27, %v1105_v27  ;;  %v430_v14 = vmul.f32 %v1115_v42, %v1115_v42 }
 0x109   : > { %v1167_v32 = vpop.f32.mrb[15].mxu1  ;;  %680 = vst.msk [vmem:[%s1120_s27 + $0x18] sm:$0xff] %vm677_vm4, %v647_v17  ;;  %v663_v37 = vmul.f32 %v631_v30, %v599_v19  ;;  %v880_v53 = vpop.eup %879  ;;  %v476_v46 = vmul.f32 -5.11866e-10, %v444_v35  ;;  %v461_v51 = vmul.f32 -5.11866e-10, %v429_v41  ;;  %v431_v34 = vmul.f32 %v1126_v54, %v1126_v54 }
 0x10a   : > { %v648_v43 = vmul.f32 %v616_v23, %v584_v25  ;;  %v882_v48 = vpop.eup %881  ;;  %v632_v49 = vadd.f32 1.0, %v880_v53  ;;  %v492_v50 = vadd.f32 0.044715, %v460_v39  ;;  %v586_v60 = vmul.f32 3.0, %v1076_v4 }
 0x10b   : > { %696 = vst.msk [vmem:[%s1120_s27 + $0x98] sm:$0xff] %vm677_vm4, %v663_v37  ;;  %v617_v57 = vadd.f32 1.0, %v882_v48  ;;  %v539_v61 = vmul.f32 %v507_v45, %v1085_v10  ;;  %v508_v62 = vadd.f32 0.044715, %v476_v46  ;;  %v884_v58 = vpop.eup %883  ;;  %v493_v59 = vadd.f32 0.044715, %v461_v51 }
 0x10c   : > { %681 = vst [vmem:[%s1120_s27 + $0x20] sm:$0xff] %v648_v43  ;;  %v664_v63 = vmul.f32 %v632_v49, %v600_v52  ;;  %v524_v0 = vmul.f32 %v492_v50, %v1095_v21  ;;  %v477_v2 = vmul.f32 -5.11866e-10, %v445_v56  ;;  %v886_v3 = vpop.eup %885  ;;  %v633_v12 = vadd.f32 1.0, %v884_v58 }
 0x10d   : > { %v649_v8 = vmul.f32 %v617_v57, %v585_v38  ;;  %891 = vtanh.f32 %v539_v61  ;;  %v540_v1 = vmul.f32 %v508_v62, %v1097_v22  ;;  %v618_v13 = vadd.f32 1.0, %v886_v3 }
 0x10e   : > { %697 = vst [vmem:[%s1120_s27 + $0xa0] sm:$0xff] %v664_v63  ;;  %893 = vtanh.f32 %v524_v0  ;;  %v525_v4 = vmul.f32 %v493_v59, %v1103_v26  ;;  %v509_v11 = vadd.f32 0.044715, %v477_v2  ;;  %v888_v18 = vpop.eup %887  ;;  %v665_v19 = vmul.f32 %v633_v12, %v601_v40 }
 0x10f   : > { %682 = vst.msk [vmem:[%s1120_s27 + $0x28] sm:$0xff] %vm677_vm4, %v649_v8  ;;  %v602_v20 = vmul.f32 3.0, %v1078_v5  ;;  %895 = vtanh.f32 %v540_v1  ;;  %v890_v24 = vpop.eup %889  ;;  %v650_v25 = vmul.f32 %v618_v13, %v586_v60  ;;  %v634_v28 = vadd.f32 1.0, %v888_v18 }
 0x110   : > { %897 = vtanh.f32 %v525_v4  ;;  %v541_v29 = vmul.f32 %v509_v11, %v1105_v27  ;;  %698 = vst.msk [vmem:[%s1120_s27 + $0xa8] sm:$0xff] %vm677_vm4, %v665_v19  ;;  %v587_v17 = vmul.f32 3.0, %v1083_v9  ;;  %v619_v30 = vadd.f32 1.0, %v890_v24 }
 0x111   : > { %v462_v44 = vmul.f32 -5.11866e-10, %v430_v14  ;;  %v446_v5 = vmul.f32 %v1122_v47, %v1122_v47  ;;  %683 = vst [vmem:[%s1120_s27 + $0x30] sm:$0xff] %v650_v25  ;;  %v666_v23 = vmul.f32 %v634_v28, %v602_v20  ;;  %v603_v52 = vmul.f32 3.0, %v1085_v10 }
 0x112   : > { %899 = vtanh.f32 %v541_v29  ;;  %v651_v35 = vmul.f32 %v619_v30, %v587_v17  ;;  %v447_v9 = vmul.f32 %v1128_v55, %v1128_v55  ;;  %v588_v39 = vmul.f32 3.0, %v1095_v21 }
 0x113   : > { %v494_v37 = vadd.f32 0.044715, %v462_v44  ;;  %v478_v38 = vmul.f32 -5.11866e-10, %v446_v5  ;;  %699 = vst [vmem:[%s1120_s27 + $0xb0] sm:$0xff] %v666_v23  ;;  %v604_v41 = vmul.f32 3.0, %v1097_v22  ;;  %v432_v43 = vmul.f32 %v1133_v6, %v1133_v6 }
 0x114   : > { %v463_v53 = vmul.f32 -5.11866e-10, %v431_v34  ;;  %684 = vst.msk [vmem:[%s1120_s27 + $0x38] sm:$0xff] %vm677_vm4, %v651_v35  ;;  %v479_v45 = vmul.f32 -5.11866e-10, %v447_v9  ;;  %v448_v46 = vmul.f32 %v1135_v7, %v1135_v7  ;;  %v589_v48 = vmul.f32 3.0, %v1103_v26 }
 0x115   : > { %v526_v10 = vmul.f32 %v494_v37, %v1115_v42  ;;  %v510_v40 = vadd.f32 0.044715, %v478_v38  ;;  %v464_v50 = vmul.f32 -5.11866e-10, %v432_v43  ;;  %v433_v21 = vmul.f32 %v1139_v15, %v1139_v15 }
 0x116   : > { %v495_v49 = vadd.f32 0.044715, %v463_v53  ;;  %v511_v56 = vadd.f32 0.044715, %v479_v45  ;;  %v480_v57 = vmul.f32 -5.11866e-10, %v448_v46  ;;  %v449_v28 = vmul.f32 %v1141_v16, %v1141_v16 }
 0x117   : > { %v892_v22 = vpop.eup %891  ;;  %901 = vtanh.f32 %v526_v10  ;;  %v542_v51 = vmul.f32 %v510_v40, %v1122_v47  ;;  %v496_v58 = vadd.f32 0.044715, %v464_v50  ;;  %v465_v63 = vmul.f32 -5.11866e-10, %v433_v21 }
 0x118   : > { %v894_v60 = vpop.eup %893  ;;  %v635_v61 = vadd.f32 1.0, %v892_v22  ;;  %v527_v62 = vmul.f32 %v495_v49, %v1126_v54  ;;  %v543_v59 = vmul.f32 %v511_v56, %v1128_v55  ;;  %v512_v2 = vadd.f32 0.044715, %v480_v57 }
 0x119   : > { %v896_v0 = vpop.eup %895  ;;  %v620_v26 = vadd.f32 1.0, %v894_v60  ;;  %903 = vtanh.f32 %v542_v51  ;;  %v528_v1 = vmul.f32 %v496_v58, %v1133_v6  ;;  %v605_v20 = vmul.f32 3.0, %v1105_v27 }
 0x11a   : > { %v898_v3 = vpop.eup %897  ;;  %v667_v8 = vmul.f32 %v635_v61, %v603_v52  ;;  %v636_v12 = vadd.f32 1.0, %v896_v0  ;;  %905 = vtanh.f32 %v527_v62  ;;  %v544_v11 = vmul.f32 %v512_v2, %v1135_v7 }
 0x11b   : > { %v652_v13 = vmul.f32 %v620_v26, %v588_v39  ;;  %v621_v4 = vadd.f32 1.0, %v898_v3  ;;  %907 = vtanh.f32 %v543_v59  ;;  %v497_v14 = vadd.f32 0.044715, %v465_v63 }
 0x11c   : > { %v900_v18 = vpop.eup %899  ;;  %700 = vst.msk [vmem:[%s1120_s27 + $0xb8] sm:$0xff] %vm677_vm4, %v667_v8  ;;  %v668_v19 = vmul.f32 %v636_v12, %v604_v41  ;;  %909 = vtanh.f32 %v528_v1  ;;  %v434_v17 = vmul.f32 %v1157_v31, %v1157_v31  ;;  %v590_v27 = vmul.f32 3.0, %v1115_v42 }
 0x11d   : > { %685 = vst [vmem:[%s1120_s27 + $0x40] sm:$0xff] %v652_v13  ;;  %v653_v24 = vmul.f32 %v621_v4, %v589_v48  ;;  %v637_v25 = vadd.f32 1.0, %v900_v18  ;;  %911 = vtanh.f32 %v544_v11  ;;  %v529_v29 = vmul.f32 %v497_v14, %v1139_v15 }
 0x11e   : > { %701 = vst [vmem:[%s1120_s27 + $0xc0] sm:$0xff] %v668_v19  ;;  %v481_v44 = vmul.f32 -5.11866e-10, %v449_v28  ;;  %v450_v5 = vmul.f32 %v1159_v33, %v1159_v33  ;;  %v606_v23 = vmul.f32 3.0, %v1122_v47  ;;  %v466_v52 = vmul.f32 -5.11866e-10, %v434_v17 }
 0x11f   : > { %686 = vst.msk [vmem:[%s1120_s27 + $0x48] sm:$0xff] %vm677_vm4, %v653_v24  ;;  %v669_v30 = vmul.f32 %v637_v25, %v605_v20  ;;  %913 = vtanh.f32 %v529_v29  ;;  %v435_v34 = vmul.f32 %v1165_v36, %v1165_v36  ;;  %v591_v37 = vmul.f32 3.0, %v1126_v54 }
 0x120   : > { %v513_v38 = vadd.f32 0.044715, %v481_v44  ;;  %v482_v9 = vmul.f32 -5.11866e-10, %v450_v5  ;;  %v451_v42 = vmul.f32 %v1167_v32, %v1167_v32  ;;  %v607_v41 = vmul.f32 3.0, %v1128_v55 }
 0x121   : > { %v902_v35 = vpop.eup %901  ;;  %702 = vst.msk [vmem:[%s1120_s27 + $0xc8] sm:$0xff] %vm677_vm4, %v669_v30  ;;  %v498_v53 = vadd.f32 0.044715, %v466_v52  ;;  %v467_v47 = vmul.f32 -5.11866e-10, %v435_v34  ;;  %v592_v10 = vmul.f32 3.0, %v1133_v6 }
 0x122   : > { %v622_v39 = vadd.f32 1.0, %v902_v35  ;;  %v545_v40 = vmul.f32 %v513_v38, %v1141_v16  ;;  %v514_v45 = vadd.f32 0.044715, %v482_v9  ;;  %v483_v46 = vmul.f32 -5.11866e-10, %v451_v42 }
 0x123   : > { %v904_v43 = vpop.eup %903  ;;  %v530_v50 = vmul.f32 %v498_v53, %v1157_v31  ;;  %v499_v21 = vadd.f32 0.044715, %v467_v47  ;;  %v608_v59 = vmul.f32 3.0, %v1135_v7  ;;  %v593_v1 = vmul.f32 3.0, %v1139_v15 }
 0x124   : > { %v906_v48 = vpop.eup %905  ;;  %v654_v54 = vmul.f32 %v622_v39, %v590_v27  ;;  %v638_v49 = vadd.f32 1.0, %v904_v43  ;;  %915 = vtanh.f32 %v545_v40  ;;  %v546_v55 = vmul.f32 %v514_v45, %v1159_v33 }
 0x125   : > { %v908_v22 = vpop.eup %907  ;;  %v623_v51 = vadd.f32 1.0, %v906_v48  ;;  %v515_v56 = vadd.f32 0.044715, %v483_v46  ;;  %917 = vtanh.f32 %v530_v50  ;;  %v531_v61 = vmul.f32 %v499_v21, %v1165_v36 }
 0x126   : > { %v910_v57 = vpop.eup %909  ;;  %687 = vst [vmem:[%s1120_s27 + $0x50] sm:$0xff] %v654_v54  ;;  %v670_v6 = vmul.f32 %v638_v49, %v606_v23  ;;  %v639_v60 = vadd.f32 1.0, %v908_v22  ;;  %919 = vtanh.f32 %v546_v55  ;;  %v609_v18 = vmul.f32 3.0, %v1141_v16 }
 0x127   : > { %v912_v62 = vpop.eup %911  ;;  %v655_v58 = vmul.f32 %v623_v51, %v591_v37  ;;  %v624_v63 = vadd.f32 1.0, %v910_v57  ;;  %v547_v0 = vmul.f32 %v515_v56, %v1167_v32  ;;  %921 = vtanh.f32 %v531_v61 }
 0x128   : > { %703 = vst [vmem:[%s1120_s27 + $0xd0] sm:$0xff] %v670_v6  ;;  %v671_v26 = vmul.f32 %v639_v60, %v607_v41  ;;  %v640_v2 = vadd.f32 1.0, %v912_v62  ;;  %v594_v14 = vmul.f32 3.0, %v1157_v31  ;;  %v610_v28 = vmul.f32 3.0, %v1159_v33 }
 0x129   : > { %688 = vst.msk [vmem:[%s1120_s27 + $0x58] sm:$0xff] %vm677_vm4, %v655_v58  ;;  %v656_v3 = vmul.f32 %v624_v63, %v592_v10  ;;  %923 = vtanh.f32 %v547_v0  ;;  %v914_v8 = vpop.eup %913  ;;  %v595_v27 = vmul.f32 3.0, %v1165_v36  ;;  %v611_v5 = vmul.f32 3.0, %v1167_v32 }
 0x12a   : > { %704 = vst.msk [vmem:[%s1120_s27 + $0xd8] sm:$0xff] %vm677_vm4, %v671_v26  ;;  %v672_v12 = vmul.f32 %v640_v2, %v608_v59  ;;  %v625_v13 = vadd.f32 1.0, %v914_v8 }
 0x12b   : > { %689 = vst [vmem:[%s1120_s27 + $0x60] sm:$0xff] %v656_v3 }
 0x12c   : > { %705 = vst [vmem:[%s1120_s27 + $0xe0] sm:$0xff] %v672_v12  ;;  %v657_v4 = vmul.f32 %v625_v13, %v593_v1 }
 0x12e   : > { %v916_v11 = vpop.eup %915  ;;  %690 = vst.msk [vmem:[%s1120_s27 + $0x68] sm:$0xff] %vm677_vm4, %v657_v4 }
 0x12f   : > { %v918_v7 = vpop.eup %917  ;;  %v641_v19 = vadd.f32 1.0, %v916_v11 }
 0x130   : > { %v920_v20 = vpop.eup %919  ;;  %v626_v24 = vadd.f32 1.0, %v918_v7 }
 0x131   : > { %v922_v25 = vpop.eup %921  ;;  %v673_v15 = vmul.f32 %v641_v19, %v609_v18  ;;  %v642_v29 = vadd.f32 1.0, %v920_v20 }
 0x132   : > { %v658_v30 = vmul.f32 %v626_v24, %v594_v14  ;;  %v627_v44 = vadd.f32 1.0, %v922_v25 }
 0x133   : > { %v924_v17 = vpop.eup %923  ;;  %706 = vst.msk [vmem:[%s1120_s27 + $0xe8] sm:$0xff] %vm677_vm4, %v673_v15  ;;  %v674_v16 = vmul.f32 %v642_v29, %v610_v28 }
 0x134   : > { %v643_v31 = vadd.f32 1.0, %v924_v17  ;;  %691 = vst [vmem:[%s1120_s27 + $0x70] sm:$0xff] %v658_v30  ;;  %v659_v23 = vmul.f32 %v627_v44, %v595_v27 }
 0x135   : > { %707 = vst [vmem:[%s1120_s27 + $0xf0] sm:$0xff] %v674_v16 }
 0x136   : > { %v675_v52 = vmul.f32 %v643_v31, %v611_v5  ;;  %692 = vst.msk [vmem:[%s1120_s27 + $0x78] sm:$0xff] %vm677_vm4, %v659_v23 }
 0x138   : > { %708 = vst.msk [vmem:[%s1120_s27 + $0xf8] sm:$0xff] %vm677_vm4, %v675_v52 }
 0x139 PF: > { %s12_s11 = sadd.s32 1, %s947_s11   ;;  %s1288_s9 = smov %s943_s10 }
 0x13a   : > { %p9_p5 = scmp.ge.s32.totalorder %s12_s11, 4   ;;  %s1289_s10 = smov %s1291_s12 }
 0x13c   :  { %11 = sbr.rel (!%p9_p5) target bundleno = 2 (0x2), region = 58 }

</bundles_post_ra>
